<compile_context>
chip_gen: v6e
topology: v6e:2x2x1
jax: 0.10.0
libtpu: 0.0.40
codegen_flags: <defaults>
</compile_context>

<pallas_src>
import jax
import jax.numpy as jnp
from jax.experimental import pallas as pl
from jax.experimental.pallas import tpu as pltpu

NEG_SLOPE = 0.01   # nn.LeakyReLU default
LANE = 128         # lane width; batch tiles are multiples of this


def _cdiv(a, b):
    return (a + b - 1) // b


def _round_up(x, m):
    return _cdiv(x, m) * m


def _leaky_relu(z):
    return jnp.where(z > 0, z, NEG_SLOPE * z)


def mlp_kernel(x_ref, w1_ref, b1_ref, w2_ref, b2_ref, w3_ref, b3_ref,
               w4_ref, b4_ref, o_ref):
    # Batch-on-lanes: x is (in_features, TB) bf16; weights are PyTorch-layout
    # (out, in) bf16; biases are (out, 1) f32.  MXU gets bf16 operands and
    # accumulates in f32 via preferred_element_type.
    x = x_ref[...]                                                        # (in, TB) bf16

    h = jnp.dot(w1_ref[...], x, preferred_element_type=jnp.float32) + b1_ref[...]
    h = _leaky_relu(h).astype(jnp.bfloat16)                               # (16, TB)

    h = jnp.dot(w2_ref[...], h, preferred_element_type=jnp.float32) + b2_ref[...]
    h = _leaky_relu(h).astype(jnp.bfloat16)                               # (32, TB)

    h = jnp.dot(w3_ref[...], h, preferred_element_type=jnp.float32) + b3_ref[...]
    h = _leaky_relu(h).astype(jnp.bfloat16)                               # (8, TB)

    logits = jnp.dot(w4_ref[...], h, preferred_element_type=jnp.float32) + b4_ref[...]

    # Numerically stable softmax over the (small, sublane) class axis.
    # Exact division -> rows sum to 1 within f32 rounding.
    m = jnp.max(logits, axis=0, keepdims=True)
    e = jnp.exp(logits - m)
    denom = jnp.sum(e, axis=0, keepdims=True)
    o_ref[...] = (e / denom).astype(o_ref.dtype)                          # (C, TB)


def obesity_classifier_forward(x, params, *, block_batch=8192):
    """x: (batch, input_size) float32.
    params: dict with PyTorch-layout weights w_i (out, in) and biases b_i (out,)."""
    batch, in_features = x.shape
    num_classes = params["w4"].shape[0]

    # --- tile selection: minimize padding; >=2 blocks when there's enough
    # work so v7x megacore gets both TensorCores busy ---------------------
    n_blocks = max(_cdiv(batch, block_batch), 1)
    if n_blocks < 2 and batch >= 2 * LANE:
        n_blocks = 2
    tb = _round_up(_cdiv(batch, n_blocks), LANE)
    b_pad = tb * n_blocks

    # Batch-on-lanes input: (in_features, b_pad), streamed as bf16.
    xt = x.T.astype(jnp.bfloat16)
    if b_pad != batch:
        xt = jnp.pad(xt, ((0, 0), (0, b_pad - batch)))

    weights = []
    for i in range(1, 5):
        weights.append(params[f"w{i}"].astype(jnp.bfloat16))                    # (out, in)
        weights.append(params[f"b{i}"].reshape(-1, 1).astype(jnp.float32))      # (out, 1)

    def _resident(shape):
        # VMEM-resident across the whole batch grid.
        return pl.BlockSpec(shape, lambda i: (0, 0))

    in_specs = [pl.BlockSpec((in_features, tb), lambda i: (0, i))]
    in_specs += [_resident(w.shape) for w in weights]
    out_spec = pl.BlockSpec((num_classes, tb), lambda i: (0, i))

    out = pl.pallas_call(
        mlp_kernel,
        out_shape=jax.ShapeDtypeStruct((num_classes, b_pad), jnp.float32),
        grid=(b_pad // tb,),
        in_specs=in_specs,
        out_specs=out_spec,
        compiler_params=pltpu.CompilerParams(
            dimension_semantics=("parallel",)),
    )(xt, *weights)

    return out[:, :batch].T   # (batch, num_classes)


def init_params(key, input_size, num_classes):
    """Mimics torch.nn.Linear default init U[-1/sqrt(fan_in), 1/sqrt(fan_in)].
    Weights stored PyTorch-style as (out, in); biases as (out,)."""
    sizes = [(16, input_size), (32, 16), (8, 32), (num_classes, 8)]
    params = {}
    for i, (fout, fin) in enumerate(sizes, start=1):
        key, kw, kb = jax.random.split(key, 3)
        bound = 1.0 / (float(fin) ** 0.5)
        params[f"w{i}"] = jax.random.uniform(
            kw, (fout, fin), jnp.float32, minval=-bound, maxval=bound)
        params[f"b{i}"] = jax.random.uniform(
            kb, (fout,), jnp.float32, minval=-bound, maxval=bound)
    return params


def reference_forward(x, params):
    # Pure-JAX reference mirroring the kernel's bf16 quantization of x / W / h
    # with f32 accumulation.
    h = x.astype(jnp.bfloat16)
    for i in range(1, 4):
        w = params[f"w{i}"].astype(jnp.bfloat16)
        z = jnp.dot(h, w.T, preferred_element_type=jnp.float32) + params[f"b{i}"]
        h = _leaky_relu(z).astype(jnp.bfloat16)
    w4 = params["w4"].astype(jnp.bfloat16)
    logits = jnp.dot(h, w4.T, preferred_element_type=jnp.float32) + params["b4"]
    return jax.nn.softmax(logits, axis=-1)


if __name__ == "__main__":
    input_size = 16
    num_classes = 7  # obesity dataset: 7 classes

    key = jax.random.PRNGKey(0)
    key, kx = jax.random.split(key)
    params = init_params(key, input_size, num_classes)

    # Small, module-scale check (single grid block, heavy batch padding path).
    x_small = jax.random.normal(kx, (8, input_size), jnp.float32)
    out_small = jax.block_until_ready(obesity_classifier_forward(x_small, params))
    ref_small = reference_forward(x_small, params)
    assert out_small.shape == (8, num_classes)
    assert jnp.allclose(out_small, ref_small, atol=2e-3, rtol=2e-3), "small-batch mismatch"
    assert jnp.allclose(jnp.sum(out_small, axis=-1), 1.0, atol=1e-3), \
        "softmax rows must sum to 1"

    # Larger batch exercises the streaming grid (>1 block) + padding path.
    key, kx2 = jax.random.split(key)
    x_big = jax.random.normal(kx2, (1000, input_size), jnp.float32)
    out_big = jax.block_until_ready(
        obesity_classifier_forward(x_big, params, block_batch=512))
    ref_big = reference_forward(x_big, params)
    assert out_big.shape == (1000, num_classes)
    assert jnp.allclose(out_big, ref_big, atol=2e-3, rtol=2e-3), "big-batch mismatch"
    assert jnp.allclose(jnp.sum(out_big, axis=-1), 1.0, atol=1e-3), \
        "softmax rows must sum to 1"

    print("KERNEL_OK")
</pallas_src>

<mosaic_0001>
module attributes {stable_mosaic.version = 11 : i64} {
  func.func @mlp_kernel(%arg0: i32, %arg1: memref<16x128xbf16, #tpu.memory_space<vmem>>, %arg2: memref<16x16xbf16, #tpu.memory_space<vmem>>, %arg3: memref<16x1xf32, #tpu.memory_space<vmem>>, %arg4: memref<32x16xbf16, #tpu.memory_space<vmem>>, %arg5: memref<32x1xf32, #tpu.memory_space<vmem>>, %arg6: memref<8x32xbf16, #tpu.memory_space<vmem>>, %arg7: memref<8x1xf32, #tpu.memory_space<vmem>>, %arg8: memref<7x8xbf16, #tpu.memory_space<vmem>>, %arg9: memref<7x1xf32, #tpu.memory_space<vmem>>, %arg10: memref<7x128xf32, #tpu.memory_space<vmem>>) attributes {dimension_semantics = [#tpu.dimension_semantics<parallel>], iteration_bounds = array<i64: 1>, scalar_prefetch = 0 : i64, scratch_operands = 0 : i64, tpu.core_type = #tpu.core_type<tc>, window_params = [{transform_indices = @transform_0, window_bounds = array<i64: 16, 128>}, {pipeline_mode = #tpu.pipeline_mode<synchronous>, transform_indices = @transform_1, window_bounds = array<i64: 16, 16>}, {pipeline_mode = #tpu.pipeline_mode<synchronous>, transform_indices = @transform_2, window_bounds = array<i64: 16, 1>}, {pipeline_mode = #tpu.pipeline_mode<synchronous>, transform_indices = @transform_3, window_bounds = array<i64: 32, 16>}, {pipeline_mode = #tpu.pipeline_mode<synchronous>, transform_indices = @transform_4, window_bounds = array<i64: 32, 1>}, {pipeline_mode = #tpu.pipeline_mode<synchronous>, transform_indices = @transform_5, window_bounds = array<i64: 8, 32>}, {pipeline_mode = #tpu.pipeline_mode<synchronous>, transform_indices = @transform_6, window_bounds = array<i64: 8, 1>}, {pipeline_mode = #tpu.pipeline_mode<synchronous>, transform_indices = @transform_7, window_bounds = array<i64: 7, 8>}, {pipeline_mode = #tpu.pipeline_mode<synchronous>, transform_indices = @transform_8, window_bounds = array<i64: 7, 1>}, {transform_indices = @transform_9, window_bounds = array<i64: 7, 128>}]} {
    %c0 = arith.constant 0 : index
    %c0_0 = arith.constant 0 : index
    %0 = vector.load %arg1[%c0, %c0_0] : memref<16x128xbf16, #tpu.memory_space<vmem>>, vector<16x128xbf16>
    %c0_1 = arith.constant 0 : index
    %c0_2 = arith.constant 0 : index
    %1 = vector.load %arg2[%c0_1, %c0_2] : memref<16x16xbf16, #tpu.memory_space<vmem>>, vector<16x16xbf16>
    %cst = arith.constant dense<0.000000e+00> : vector<16x128xf32>
    %2 = tpu.matmul %1, %0, %cst {dimension_numbers = #tpu.dot_dimension_numbers<[1], [0], [0], [1], [0, 0, 1, 1], [], []>} : vector<16x16xbf16>, vector<16x128xbf16>, vector<16x128xf32> -> vector<16x128xf32>
    %c0_3 = arith.constant 0 : index
    %c0_4 = arith.constant 0 : index
    %3 = vector.load %arg3[%c0_3, %c0_4] : memref<16x1xf32, #tpu.memory_space<vmem>>, vector<16x1xf32>
    %4 = vector.broadcast %3 : vector<16x1xf32> to vector<16x128xf32>
    %5 = arith.addf %2, %4 : vector<16x128xf32>
    %cst_5 = arith.constant 0.000000e+00 : f32
    %6 = vector.broadcast %cst_5 : f32 to vector<16x128xf32>
    %7 = arith.cmpf ogt, %5, %6 : vector<16x128xf32>
    %cst_6 = arith.constant 0.00999999977 : f32
    %8 = vector.broadcast %cst_6 : f32 to vector<16x128xf32>
    %9 = arith.mulf %8, %5 : vector<16x128xf32>
    %10 = arith.select %7, %5, %9 : vector<16x128xi1>, vector<16x128xf32>
    %11 = arith.truncf %10 : vector<16x128xf32> to vector<16x128xbf16>
    %c0_7 = arith.constant 0 : index
    %c0_8 = arith.constant 0 : index
    %12 = vector.load %arg4[%c0_7, %c0_8] : memref<32x16xbf16, #tpu.memory_space<vmem>>, vector<32x16xbf16>
    %cst_9 = arith.constant dense<0.000000e+00> : vector<32x128xf32>
    %13 = tpu.matmul %12, %11, %cst_9 {dimension_numbers = #tpu.dot_dimension_numbers<[1], [0], [0], [1], [0, 0, 1, 1], [], []>} : vector<32x16xbf16>, vector<16x128xbf16>, vector<32x128xf32> -> vector<32x128xf32>
    %c0_10 = arith.constant 0 : index
    %c0_11 = arith.constant 0 : index
    %14 = vector.load %arg5[%c0_10, %c0_11] : memref<32x1xf32, #tpu.memory_space<vmem>>, vector<32x1xf32>
    %15 = vector.broadcast %14 : vector<32x1xf32> to vector<32x128xf32>
    %16 = arith.addf %13, %15 : vector<32x128xf32>
    %cst_12 = arith.constant 0.000000e+00 : f32
    %17 = vector.broadcast %cst_12 : f32 to vector<32x128xf32>
    %18 = arith.cmpf ogt, %16, %17 : vector<32x128xf32>
    %cst_13 = arith.constant 0.00999999977 : f32
    %19 = vector.broadcast %cst_13 : f32 to vector<32x128xf32>
    %20 = arith.mulf %19, %16 : vector<32x128xf32>
    %21 = arith.select %18, %16, %20 : vector<32x128xi1>, vector<32x128xf32>
    %22 = arith.truncf %21 : vector<32x128xf32> to vector<32x128xbf16>
    %c0_14 = arith.constant 0 : index
    %c0_15 = arith.constant 0 : index
    %23 = vector.load %arg6[%c0_14, %c0_15] : memref<8x32xbf16, #tpu.memory_space<vmem>>, vector<8x32xbf16>
    %cst_16 = arith.constant dense<0.000000e+00> : vector<8x128xf32>
    %24 = tpu.matmul %23, %22, %cst_16 {dimension_numbers = #tpu.dot_dimension_numbers<[1], [0], [0], [1], [0, 0, 1, 1], [], []>} : vector<8x32xbf16>, vector<32x128xbf16>, vector<8x128xf32> -> vector<8x128xf32>
    %c0_17 = arith.constant 0 : index
    %c0_18 = arith.constant 0 : index
    %25 = vector.load %arg7[%c0_17, %c0_18] : memref<8x1xf32, #tpu.memory_space<vmem>>, vector<8x1xf32>
    %26 = vector.broadcast %25 : vector<8x1xf32> to vector<8x128xf32>
    %27 = arith.addf %24, %26 : vector<8x128xf32>
    %cst_19 = arith.constant 0.000000e+00 : f32
    %28 = vector.broadcast %cst_19 : f32 to vector<8x128xf32>
    %29 = arith.cmpf ogt, %27, %28 : vector<8x128xf32>
    %cst_20 = arith.constant 0.00999999977 : f32
    %30 = vector.broadcast %cst_20 : f32 to vector<8x128xf32>
    %31 = arith.mulf %30, %27 : vector<8x128xf32>
    %32 = arith.select %29, %27, %31 : vector<8x128xi1>, vector<8x128xf32>
    %33 = arith.truncf %32 : vector<8x128xf32> to vector<8x128xbf16>
    %c0_21 = arith.constant 0 : index
    %c0_22 = arith.constant 0 : index
    %34 = vector.load %arg8[%c0_21, %c0_22] : memref<7x8xbf16, #tpu.memory_space<vmem>>, vector<7x8xbf16>
    %cst_23 = arith.constant dense<0.000000e+00> : vector<7x128xf32>
    %35 = tpu.matmul %34, %33, %cst_23 {dimension_numbers = #tpu.dot_dimension_numbers<[1], [0], [0], [1], [0, 0, 1, 1], [], []>} : vector<7x8xbf16>, vector<8x128xbf16>, vector<7x128xf32> -> vector<7x128xf32>
    %c0_24 = arith.constant 0 : index
    %c0_25 = arith.constant 0 : index
    %36 = vector.load %arg9[%c0_24, %c0_25] : memref<7x1xf32, #tpu.memory_space<vmem>>, vector<7x1xf32>
    %37 = vector.broadcast %36 : vector<7x1xf32> to vector<7x128xf32>
    %38 = arith.addf %35, %37 : vector<7x128xf32>
    %cst_26 = arith.constant dense<0xFF800000> : vector<128xf32>
    %39 = vector.multi_reduction <maximumf>, %38, %cst_26 [0] : vector<7x128xf32> to vector<128xf32>
    %40 = vector.shape_cast %39 : vector<128xf32> to vector<1x128xf32>
    %41 = vector.broadcast %40 : vector<1x128xf32> to vector<7x128xf32>
    %42 = arith.subf %38, %41 : vector<7x128xf32>
    %43 = math.exp %42 : vector<7x128xf32>
    %cst_27 = arith.constant dense<0.000000e+00> : vector<128xf32>
    %44 = vector.multi_reduction <add>, %43, %cst_27 [0] : vector<7x128xf32> to vector<128xf32>
    %45 = vector.shape_cast %44 : vector<128xf32> to vector<1x128xf32>
    %46 = vector.broadcast %45 : vector<1x128xf32> to vector<7x128xf32>
    %47 = arith.divf %43, %46 : vector<7x128xf32>
    %c0_28 = arith.constant 0 : index
    %c0_29 = arith.constant 0 : index
    %48 = vector.load %arg10[%c0_28, %c0_29] : memref<7x128xf32, #tpu.memory_space<vmem>>, vector<7x128xf32>
    tpu.vector_store %arg10[%c0_28, %c0_29], %47 {strides = array<i32>} : memref<7x128xf32, #tpu.memory_space<vmem>>, vector<7x128xf32>,
    return
  }
  func.func @transform_0(%arg0: i32) -> (i32, i32) {
    %c0_i32 = arith.constant 0 : i32
    %c0_i32_0 = arith.constant 0 : i32
    return %c0_i32, %arg0 : i32, i32
  }
  func.func @transform_1(%arg0: i32) -> (i32, i32) {
    %c0_i32 = arith.constant 0 : i32
    %c0_i32_0 = arith.constant 0 : i32
    %c0_i32_1 = arith.constant 0 : i32
    return %c0_i32, %c0_i32_0 : i32, i32
  }
  func.func @transform_2(%arg0: i32) -> (i32, i32) {
    %c0_i32 = arith.constant 0 : i32
    %c0_i32_0 = arith.constant 0 : i32
    %c0_i32_1 = arith.constant 0 : i32
    return %c0_i32, %c0_i32_0 : i32, i32
  }
  func.func @transform_3(%arg0: i32) -> (i32, i32) {
    %c0_i32 = arith.constant 0 : i32
    %c0_i32_0 = arith.constant 0 : i32
    %c0_i32_1 = arith.constant 0 : i32
    return %c0_i32, %c0_i32_0 : i32, i32
  }
  func.func @transform_4(%arg0: i32) -> (i32, i32) {
    %c0_i32 = arith.constant 0 : i32
    %c0_i32_0 = arith.constant 0 : i32
    %c0_i32_1 = arith.constant 0 : i32
    return %c0_i32, %c0_i32_0 : i32, i32
  }
  func.func @transform_5(%arg0: i32) -> (i32, i32) {
    %c0_i32 = arith.constant 0 : i32
    %c0_i32_0 = arith.constant 0 : i32
    %c0_i32_1 = arith.constant 0 : i32
    return %c0_i32, %c0_i32_0 : i32, i32
  }
  func.func @transform_6(%arg0: i32) -> (i32, i32) {
    %c0_i32 = arith.constant 0 : i32
    %c0_i32_0 = arith.constant 0 : i32
    %c0_i32_1 = arith.constant 0 : i32
    return %c0_i32, %c0_i32_0 : i32, i32
  }
  func.func @transform_7(%arg0: i32) -> (i32, i32) {
    %c0_i32 = arith.constant 0 : i32
    %c0_i32_0 = arith.constant 0 : i32
    %c0_i32_1 = arith.constant 0 : i32
    return %c0_i32, %c0_i32_0 : i32, i32
  }
  func.func @transform_8(%arg0: i32) -> (i32, i32) {
    %c0_i32 = arith.constant 0 : i32
    %c0_i32_0 = arith.constant 0 : i32
    %c0_i32_1 = arith.constant 0 : i32
    return %c0_i32, %c0_i32_0 : i32, i32
  }
  func.func @transform_9(%arg0: i32) -> (i32, i32) {
    %c0_i32 = arith.constant 0 : i32
    %c0_i32_0 = arith.constant 0 : i32
    return %c0_i32, %arg0 : i32, i32
  }
}

</mosaic_0001>

<bundles_post_ra>
// kernel: tpu_custom_call.1
= control target key start
LH: loop header
LB: loop body
LE: loop exit
PB: predicated region body
PF: predicated region fallthrough
CT: control target
= control target key end

     0   :  { %v446_v1 = vmov 0.0   ;;  %vm447_vm0 = vmmov 0   ;;  %vm61_vm1 = vcmask 130048   ;;  %v448_v4 = vmov 0   ;;  %s560_s0 = inlined_call_operand.vmem [shape: bf16[16,128], index: 0, kind: input, shape index: {}]   ;;  %s561_s1 = inlined_call_operand.vmem [shape: bf16[16,16], index: 1, kind: input, shape index: {}]   ;;  %s562_s2 = inlined_call_operand.vmem [shape: f32[16,1], index: 2, kind: input, shape index: {}]   ;;  %s563_s3 = inlined_call_operand.vmem [shape: bf16[32,16], index: 3, kind: input, shape index: {}]   ;;  %s564_s4 = inlined_call_operand.vmem [shape: f32[32,1], index: 4, kind: input, shape index: {}]   ;;  %s565_s5 = inlined_call_operand.vmem [shape: bf16[8,32], index: 5, kind: input, shape index: {}]   ;;  %s566_s6 = inlined_call_operand.vmem [shape: f32[8,1], index: 6, kind: input, shape index: {}]   ;;  %s567_s7 = inlined_call_operand.vmem [shape: bf16[7,8], index: 7, kind: input, shape index: {}]   ;;  %s568_s8 = inlined_call_operand.vmem [shape: f32[7,1], index: 8, kind: input, shape index: {}]   ;;  %s569_s9 = inlined_call_operand.hbm [shape: f32[7,128], index: 9, kind: output, shape index: {}]  }
   0x1   :  { %v416_v0 = vld [vmem:[%s560_s0] sm:$0xff]   ;;  %384 = vmatprep.subr.bf16.mxu0 %v446_v1  ;;  %386 = vmatprep.mubr.msk.bf16.mxu0 %vm447_vm0, %v446_v1 }
   0x2   :  { %v417_v2 = vld [vmem:[%s561_s1] sm:$0xff]   ;;  %385 = vmatpush3.bf16.msra.mxu0 %v416_v0  ;;  %414 = vset.pattern.permute.xlu0 %v448_v4 }
   0x3   :  { %v38_v3 = vld [vmem:[%s562_s2] sm:$0xff]  ;;  %415 = vset.pattern.permute.xlu1 %v448_v4  ;;  %396 = vmatprep.subr.bf16.mxu0 %v446_v1 }
   0x4   :  { %42 = vperm.xlu0 %414, %v38_v3  }
   0x5   :  { %14 = vsyncpa [#allocation3], 0  ;;  %387 = vmatmul.mubr.msk.bf16.vlgmr.msra.gmra.mxu0 %vm61_vm1, %v417_v2  ;;  %v39_v5 = vld [vmem:[%s562_s2 + $0x8] sm:$0xff]  ;;  %v117_v6 = vld [vmem:[%s564_s4] sm:$0xff]  ;;  %vm227_vm8 = vcmask 261120   ;;  %vm286_vm10 = vcmask 1043456  }
   0x6   :  { %400 = vmatprep.mubr.msk.bf16.mxu0 %vm447_vm0, %v446_v1  ;;  %v221_v7 = vld [vmem:[%s566_s6] sm:$0xff]  ;;  %v119_v9 = vld [vmem:[%s564_s4 + $0x10] sm:$0xff]  ;;  %v120_v10 = vld [vmem:[%s564_s4 + $0x18] sm:$0xff]  ;;  %vm282_vm11 = vcmask 64512   ;;  %vm330_vm12 = vcmask 1046528  }
   0x7   :  { %v418_v8 = vld [vmem:[%s563_s3] sm:$0xff]   ;;  %133 = vperm.xlu1 %415, %v119_v9   ;;  %v118_v11 = vld [vmem:[%s564_s4 + $0x8] sm:$0xff] }
   0x8   :  { %47 = vperm.xlu0 %414, %v39_v5   ;;  %392 = vmatprep.mubr.msk.bf16.mxu1 %vm61_vm1, %v418_v8  ;;  %v276_v12 = vld [vmem:[%s568_s8] sm:$0x7f]  ;;  %v419_v26 = vld [vmem:[%s563_s3 + $0x8] sm:$0xff]  }
   0x9   :  { %v220_v49 = vld [vmem:[%s565_s5] sm:$0xf]  ;;  %s449_s5 = smov [#allocation2]  }
   0xa   :  { %v275_v60 = vld [vmem:[%s567_s7] sm:$0xf]  ;;  %s357_s7 = sshll.u32 %s449_s5, 4  ;;  %s358_s7 = int_to_ptr.vmem [resolvable:$true] %s357_s7 }
   0xb   :  { %138 = vperm.xlu1 %415, %v120_v10   ;;  %s424_s30 = scalar_lea.vmem %s358_s7, 128  ;;  %p429_p1 = scmp.lt.s32.totalorder %s358_s7, %s358_s7 }
   0xc   :  { %123 = vperm.xlu0 %414, %v117_v6   ;;  %p425_p0 = scmp.ne.s32.totalorder %s358_s7, %s424_s30  ;;  %p430_p2 = scmp.lt.s32.totalorder %s424_s30, %s424_s30 }
   0xe   :  { %p431_p3 = por %p430_p2, %p429_p1 }
   0xf   :  { %128 = vperm.xlu1 %415, %v118_v11  }
  0x10   :  { %224 = vperm.xlu0 %414, %v221_v7   ;;  %p432_p4 = pnand %p431_p3, %p425_p0 }
  0x13   :  { %279 = vperm.xlu1 %415, %v276_v12  }
  0x7f   :  { %v43_v13 = vpop.permute.xlu0 %42 }
  0x82   :  { %v134_v27 = vpop.permute.xlu1 %133 }
  0x83   :  { %v48_v17 = vpop.permute.xlu0 %47 }
  0x86   :  { %v139_v28 = vpop.permute.xlu1 %138 }
  0x87   :  { %v124_v32 = vpop.permute.xlu0 %123 }
  0x8a   :  { %v129_v37 = vpop.permute.xlu1 %128 }
  0x8b   :  { %v225_v50 = vpop.permute.xlu0 %224 }
  0x8e   :  { %v280_v61 = vpop.permute.xlu1 %279 }
  0xc5   :  { %v99_v14 = vpop.f32.mrf.mxu0 }
  0xc6   :  { %v100_v15 = vadd.f32 %v99_v14, %v43_v13 }
  0xc7   :  { %v388_v16 = vpop.f32.mrf.mxu0 }
  0xc8   :  { %v108_v19 = vmul.f32 0.01, %v100_v15  ;;  %vm106_vm2 = vcmp.gt.f32.partialorder %v100_v15, 0.0 }
  0xc9   :  { %v102_v18 = vpop.f32.mrf.mxu0 }
  0xca   :  { %v103_v20 = vadd.f32 %v102_v18, %v48_v17  ;;  %v110_v23 = vsel %vm106_vm2, %v100_v15, %v108_v19 }
  0xcb   :  { %v389_v21 = vpop.f32.mrf.mxu0 }
  0xcc   :  { %v109_v22 = vmul.f32 0.01, %v103_v20  ;;  %vm107_vm3 = vcmp.gt.f32.partialorder %v103_v20, 0.0 }
  0xce   :  { %v111_v24 = vsel %vm107_vm3, %v103_v20, %v109_v22 }
  0xcf   :  { %v112_v25 = vpack.c.bf16 %v111_v24, %v110_v23 }
  0xd1   :  { %390 = vmatprep.subr.bf16.mxu1 %v112_v25 }
  0xd2   :  { %391 = vmatpush3.bf16.msra.mxu1 %v112_v25 }
  0xd3   :  { %404 = vmatprep.subr.bf16.mxu1 %v446_v1 }
  0xd5   :  { %393 = vmatmul.mubr.msk.bf16.vlgmr.msra.gmra.mxu1 %vm61_vm1, %v419_v26 }
  0xd6   :  { %406 = vmatprep.mubr.msk.bf16.mxu1 %vm447_vm0, %v446_v1 }
 0x195   :  { %v394_v29 = vpop.f32.mrf.mxu1 }
 0x196   :  { %v200_v30 = vadd.f32 %v394_v29, %v134_v27 }
 0x197   :  { %v191_v31 = vpop.f32.mrf.mxu1 }
 0x198   :  { %v212_v33 = vmul.f32 0.01, %v200_v30  ;;  %vm208_vm4 = vcmp.gt.f32.partialorder %v200_v30, 0.0  ;;  %v192_v35 = vadd.f32 %v191_v31, %v124_v32 }
 0x199   :  { %v395_v34 = vpop.f32.mrf.mxu1 }
 0x19a   :  { %v203_v36 = vadd.f32 %v395_v34, %v139_v28  ;;  %v216_v41 = vsel %vm208_vm4, %v200_v30, %v212_v33  ;;  %v210_v42 = vmul.f32 0.01, %v192_v35  ;;  %vm206_vm7 = vcmp.gt.f32.partialorder %v192_v35, 0.0 }
 0x19b   :  { %v194_v38 = vpop.f32.mrf.mxu1 }
 0x19c   :  { %vm209_vm5 = vcmp.gt.f32.partialorder %v203_v36, 0.0  ;;  %v213_v39 = vmul.f32 0.01, %v203_v36  ;;  %v195_v40 = vadd.f32 %v194_v38, %v129_v37  ;;  %v214_v47 = vsel %vm206_vm7, %v192_v35, %v210_v42 }
 0x19e   :  { %v217_v43 = vsel %vm209_vm5, %v203_v36, %v213_v39  ;;  %vm207_vm6 = vcmp.gt.f32.partialorder %v195_v40, 0.0  ;;  %v211_v44 = vmul.f32 0.01, %v195_v40 }
 0x19f   :  { %v219_v45 = vpack.c.bf16 %v217_v43, %v216_v41 }
 0x1a0   :  { %v215_v46 = vsel %vm207_vm6, %v195_v40, %v211_v44 }
 0x1a1   :  { %397 = vmatpush3.bf16.msra.mxu0 %v219_v45  ;;  %v218_v48 = vpack.c.bf16 %v215_v46, %v214_v47 }
 0x1a2   :  { %398 = vmatprep.subr.bf16.mxu0 %v446_v1 }
 0x1a5   :  { %399 = vmatpush3.bf16.msra.mxu0 %v218_v48 }
 0x1a8   :  { %401 = vmatmul.mubr.msk.bf16.vlgmr.msra.gmra.mxu0 %vm227_vm8, %v220_v49 }
 0x268   :  { %v265_v51 = vpop.f32.mrf.mxu0 }
 0x269   :  { %v266_v52 = vadd.f32 %v265_v51, %v225_v50 }
 0x26a   :  { %v402_v53 = vpop.f32.mrf.mxu0 }
 0x26b   :  { %vm271_vm9 = vcmp.gt.f32.partialorder %v266_v52, 0.0  ;;  %v272_v54 = vmul.f32 0.01, %v266_v52 }
 0x26c   :  { %v268_v55 = vpop.f32.mrf.mxu0 }
 0x26d   :  { %v273_v56 = vsel %vm271_vm9, %v266_v52, %v272_v54 }
 0x26e   :  { %v274_v57 = vpack.c.bf16 %v273_v56, %v273_v56  ;;  %v403_v58 = vpop.f32.mrf.mxu0 }
 0x270   :  { %v288_v59 = vsel %vm286_vm10, %v274_v57, 0 }
 0x271   :  { %405 = vmatpush3.bf16.msra.mxu1 %v288_v59 }
 0x274   :  { %407 = vmatmul.mubr.msk.bf16.vlgmr.msra.gmra.mxu1 %vm282_vm11, %v275_v60 }
 0x334   :  { %v324_v62 = vpop.f32.mrf.mxu1 }
 0x335   :  { %v325_v63 = vadd.f32 %v324_v62, %v280_v61 }
 0x336   :  { %v408_v0 = vpop.f32.mrf.mxu1 }
 0x337   :  { %v331_v1 = vsel %vm330_vm12, %v325_v63, -inf }
 0x338   :  { %v332_v2 = vrot.slane %v331_v1, 4  ;;  %v327_v3 = vpop.f32.mrf.mxu1 }
 0x33a   :  { %v333_v4 = vmax.f32 %v331_v1, %v332_v2  ;;  %v409_v5 = vpop.f32.mrf.mxu1 }
 0x33c   :  { %v334_v6 = vrot.slane %v333_v4, 2 }
 0x33e   :  { %v335_v7 = vmax.f32 %v333_v4, %v334_v6 }
 0x340   :  { %v336_v8 = vrot.slane %v335_v7, 1 }
 0x342   :  { %v337_v9 = vmax.f32 %v335_v7, %v336_v8 }
 0x344   :  { %v338_v10 = vsub.f32 %v325_v63, %v337_v9 }
 0x346   :  { %v339_v11 = vmul.f32 1.442695, %v338_v10 }
 0x348   :  { %420 = vpow2.f32 %v339_v11 }
 0x355   :  { %v421_v12 = vpop.eup %420 }
 0x356   :  { %v341_v13 = vsel %vm330_vm12, %v421_v12, 0.0 }
 0x357   :  { %v342_v14 = vrot.slane %v341_v13, 4 }
 0x359   :  { %v343_v15 = vadd.f32 %v342_v14, %v341_v13 }
 0x35b   :  { %v344_v16 = vrot.slane %v343_v15, 2 }
 0x35d   :  { %v345_v17 = vadd.f32 %v344_v16, %v343_v15 }
 0x35f   :  { %v346_v18 = vrot.slane %v345_v17, 1 }
 0x361   :  { %v347_v19 = vadd.f32 %v346_v18, %v345_v17 }
 0x363   :  { %422 = vrcp.f32 %v347_v19 }
 0x370   :  { %v423_v20 = vpop.eup %422 }
 0x371   :  { %v349_v21 = vmul.f32 %v423_v20, %v421_v12 }
 0x373   :  { %350 = vst [vmem:[#allocation2] sm:$0x7f] %v349_v21 }
 0x374   :  { %435 = shalt.err (!%p432_p4)
}
 0x375   :  { %360 = dma.vmem_to_hbm [thread:$0]  %s358_s7, 128, %s569_s9, [#allocation3]  }
 0x376   :  { %444 = dma.done.wait [#allocation3], 128  }
 0x377   :  { %445 = vsyncadd [#allocation3], 4294967168 }
 0x378   :  { %364 = vsyncpa [#allocation3], 1 }

</bundles_post_ra>
